<compile_context>
chip_gen: v7x
topology: tpu7x:2x2x1
jax: 0.10.0
libtpu: 0.0.40
codegen_flags: <defaults>
</compile_context>

<pallas_src>
import functools

import jax
import jax.numpy as jnp
from jax.experimental import pallas as pl
from jax.experimental.pallas import tpu as pltpu

_LANES = 128
_SUB = 8        # f32 sublane quantum (partial-sum tile height)
_ROWQ = 16      # row-tile quantum: legal for f32 (8,128) and bf16 (16,128) tiling


def _rank_hinge_kernel(pos_ref, neg_ref, o_ref, *, k, d, margin, reduction):
    # pos_ref: (D, TR, 128); neg_ref: (K = num_neg*D, TR, 128); lanes = groups.
    # Stream slab-by-slab so live intermediates stay ~one (TR, 128) f32 slab.
    acc = neg_ref[0].astype(jnp.float32)
    for i in range(1, k):                                   # (K-1) VPU adds, no XLU
        acc = acc + neg_ref[i].astype(jnp.float32)
    # margin - pos + neg_mean  ==  base - pos
    base = acc * jnp.float32(1.0 / k) + jnp.float32(margin)  # (TR, 128)

    if reduction == "none":
        for di in range(d):
            o_ref[di] = jnp.maximum(
                0.0, base - pos_ref[di].astype(jnp.float32)
            ).astype(o_ref.dtype)
    else:
        lsum = jnp.maximum(0.0, base - pos_ref[0].astype(jnp.float32))
        for di in range(1, d):
            lsum = lsum + jnp.maximum(0.0, base - pos_ref[di].astype(jnp.float32))
        tr = lsum.shape[0]
        part = lsum[0:_SUB, :]
        for j in range(1, tr // _SUB):                      # aligned (8,128) folds: VPU only
            part = part + lsum[j * _SUB:(j + 1) * _SUB, :]
        o_ref[0] = part                                     # lane-dense partial store


def rank_hinge_loss(y_pred, num_neg: int = 1, margin: float = 1.0,
                    reduction: str = "mean", block_rows: int | None = None):
    """Pallas TPU implementation of RankHingeLoss.forward."""
    n, d = y_pred.shape
    step = num_neg + 1
    assert n % step == 0, "N must be divisible by (num_neg + 1)"
    g = n // step
    k = num_neg * d

    # ---- wrapper-side layout glue: group axis onto lanes (lane-dense slabs) ----
    # No dtype cast here: bf16 inputs stay bf16 in HBM; the kernel upcasts in-register.
    yt = jnp.transpose(y_pred.reshape(g, step * d), (1, 0))      # (step*D, G)
    pos_t = yt[:d]                                               # (D, G)
    neg_t = yt[d:]                                               # (num_neg*D, G)

    # ---- tile sizing: largest TR (multiple of 16, <=512) whose double-buffered
    #      blocks stay well under scoped-VMEM defaults (v5e 16 MiB, v6e/v7x 32 MiB) ----
    row_need = pl.cdiv(g, _LANES)
    out_rows = d if reduction == "none" else 0
    bytes_per_row = _LANES * 4 * (d + k + out_rows)              # f32 upper bound
    budget = 4 * 1024 * 1024
    if block_rows is None:
        tr = max(_ROWQ, min(512, (budget // bytes_per_row) // _ROWQ * _ROWQ))
    else:
        tr = max(_ROWQ, (block_rows // _ROWQ) * _ROWQ)
    tr = min(tr, pl.cdiv(row_need, _ROWQ) * _ROWQ)               # don't over-pad tiny inputs
    grid_n = pl.cdiv(row_need, tr)
    r_total = grid_n * tr
    g_pad = r_total * _LANES

    # Padded groups contribute exactly 0 loss: max(0, margin - 1e30 + 0) == 0,
    # so 'sum'/'mean' are unaffected; 'none' slices the padding off below.
    pos_p = jnp.pad(pos_t, ((0, 0), (0, g_pad - g)), constant_values=1e30)
    neg_p = jnp.pad(neg_t, ((0, 0), (0, g_pad - g)), constant_values=0)
    pos_p = pos_p.reshape(d, r_total, _LANES)
    neg_p = neg_p.reshape(k, r_total, _LANES)

    kernel = functools.partial(_rank_hinge_kernel, k=k, d=d, margin=float(margin),
                               reduction=reduction)

    in_specs = [
        pl.BlockSpec((d, tr, _LANES), lambda i: (0, i, 0)),
        pl.BlockSpec((k, tr, _LANES), lambda i: (0, i, 0)),
    ]
    if reduction == "none":
        out_shape = jax.ShapeDtypeStruct((d, r_total, _LANES), y_pred.dtype)
        out_spec = pl.BlockSpec((d, tr, _LANES), lambda i: (0, i, 0))
    else:
        # One lane-dense (8,128) partial per tile; the final scalar reduce is
        # trivial wrapper glue.  Keeps the grid axis 'parallel'.
        out_shape = jax.ShapeDtypeStruct((grid_n, _SUB, _LANES), jnp.float32)
        out_spec = pl.BlockSpec((1, _SUB, _LANES), lambda i: (i, 0, 0))

    out = pl.pallas_call(
        kernel,
        out_shape=out_shape,
        grid=(grid_n,),
        in_specs=in_specs,
        out_specs=out_spec,
        compiler_params=pltpu.CompilerParams(
            dimension_semantics=("parallel",)),
    )(pos_p, neg_p)

    if reduction == "none":
        return jnp.transpose(out.reshape(d, g_pad)[:, :g], (1, 0))   # back to (G, D)
    total = jnp.sum(out)
    if reduction == "mean":
        total = total / jnp.float32(g * d)
    return total.astype(y_pred.dtype)


def _reference(y_pred, num_neg=1, margin=1.0, reduction="mean"):
    # Pure-JAX reference mirroring the PyTorch module exactly.
    step = num_neg + 1
    y_pos = y_pred[::step, :]
    y_neg = jnp.concatenate(
        [y_pred[i + 1::step, :] for i in range(num_neg)], axis=-1
    )
    y_neg = jnp.mean(y_neg, axis=-1, keepdims=True)
    loss = jnp.maximum(0.0, -(y_pos - y_neg) + margin)
    if reduction == "none":
        return loss
    if reduction == "sum":
        return jnp.sum(loss)
    return jnp.mean(loss)


if __name__ == "__main__":
    key = jax.random.PRNGKey(0)
    margin = 1.0
    configs = [
        dict(num_neg=1, d=1, groups=8, block_rows=None),     # typical: D=1 score column
        dict(num_neg=3, d=2, groups=6, block_rows=None),     # general: multiple negs, D>1
        dict(num_neg=2, d=1, groups=2304, block_rows=16),    # multi-tile grid + lane padding
    ]
    for ci, cfg in enumerate(configs):
        num_neg, d, groups = cfg["num_neg"], cfg["d"], cfg["groups"]
        n = groups * (num_neg + 1)
        y_pred = jax.random.normal(jax.random.fold_in(key, ci), (n, d),
                                   dtype=jnp.float32)
        for reduction in ("mean", "sum", "none"):
            out = rank_hinge_loss(y_pred, num_neg=num_neg, margin=margin,
                                  reduction=reduction,
                                  block_rows=cfg["block_rows"])
            out = jax.block_until_ready(out)
            ref = _reference(y_pred, num_neg=num_neg, margin=margin,
                             reduction=reduction)
            assert jnp.allclose(out, ref, rtol=1e-5, atol=1e-5), (
                cfg, reduction, out, ref)

    print("KERNEL_OK")
</pallas_src>

<mosaic_0001>
module attributes {stable_mosaic.version = 11 : i64} {
  func.func @_rank_hinge_kernel(%arg0: i32, %arg1: memref<1x16x128xf32, #tpu.memory_space<vmem>>, %arg2: memref<1x16x128xf32, #tpu.memory_space<vmem>>, %arg3: memref<1x8x128xf32, #tpu.memory_space<vmem>>) attributes {dimension_semantics = [#tpu.dimension_semantics<parallel>], iteration_bounds = array<i64: 1>, scalar_prefetch = 0 : i64, scratch_operands = 0 : i64, tpu.core_type = #tpu.core_type<tc>, window_params = [{transform_indices = @transform_0, window_bounds = array<i64: 1, 16, 128>}, {transform_indices = @transform_1, window_bounds = array<i64: 1, 16, 128>}, {transform_indices = @transform_2, window_bounds = array<i64: 1, 8, 128>}]} {
    %c0 = arith.constant 0 : index
    %c0_0 = arith.constant 0 : index
    %c0_1 = arith.constant 0 : index
    %0 = vector.load %arg2[%c0, %c0_0, %c0_1] : memref<1x16x128xf32, #tpu.memory_space<vmem>>, vector<1x16x128xf32>
    %1 = vector.shape_cast %0 : vector<1x16x128xf32> to vector<16x128xf32>
    %cst = arith.constant 1.000000e+00 : f32
    %2 = vector.broadcast %cst : f32 to vector<16x128xf32>
    %3 = arith.mulf %1, %2 : vector<16x128xf32>
    %cst_2 = arith.constant 1.000000e+00 : f32
    %4 = vector.broadcast %cst_2 : f32 to vector<16x128xf32>
    %5 = arith.addf %3, %4 : vector<16x128xf32>
    %c0_3 = arith.constant 0 : index
    %c0_4 = arith.constant 0 : index
    %c0_5 = arith.constant 0 : index
    %6 = vector.load %arg1[%c0_3, %c0_4, %c0_5] : memref<1x16x128xf32, #tpu.memory_space<vmem>>, vector<1x16x128xf32>
    %7 = vector.shape_cast %6 : vector<1x16x128xf32> to vector<16x128xf32>
    %8 = arith.subf %5, %7 : vector<16x128xf32>
    %cst_6 = arith.constant 0.000000e+00 : f32
    %9 = vector.broadcast %cst_6 : f32 to vector<16x128xf32>
    %10 = arith.maximumf %9, %8 : vector<16x128xf32>
    %11 = vector.extract_strided_slice %10 {offsets = [0, 0], sizes = [8, 128], strides = [1, 1]} : vector<16x128xf32> to vector<8x128xf32>
    %12 = vector.extract_strided_slice %10 {offsets = [8, 0], sizes = [8, 128], strides = [1, 1]} : vector<16x128xf32> to vector<8x128xf32>
    %13 = arith.addf %11, %12 : vector<8x128xf32>
    %c0_7 = arith.constant 0 : index
    %c0_8 = arith.constant 0 : index
    %c0_9 = arith.constant 0 : index
    %14 = vector.load %arg3[%c0_7, %c0_8, %c0_9] : memref<1x8x128xf32, #tpu.memory_space<vmem>>, vector<1x8x128xf32>
    %15 = vector.shape_cast %14 : vector<1x8x128xf32> to vector<8x128xf32>
    %16 = vector.shape_cast %13 : vector<8x128xf32> to vector<1x8x128xf32>
    tpu.vector_store %arg3[%c0_7, %c0_8, %c0_9], %16 {strides = array<i32>} : memref<1x8x128xf32, #tpu.memory_space<vmem>>, vector<1x8x128xf32>,
    return
  }
  func.func @transform_0(%arg0: i32) -> (i32, i32, i32) {
    %c0_i32 = arith.constant 0 : i32
    %c0_i32_0 = arith.constant 0 : i32
    %c0_i32_1 = arith.constant 0 : i32
    return %c0_i32, %arg0, %c0_i32_0 : i32, i32, i32
  }
  func.func @transform_1(%arg0: i32) -> (i32, i32, i32) {
    %c0_i32 = arith.constant 0 : i32
    %c0_i32_0 = arith.constant 0 : i32
    %c0_i32_1 = arith.constant 0 : i32
    return %c0_i32, %arg0, %c0_i32_0 : i32, i32, i32
  }
  func.func @transform_2(%arg0: i32) -> (i32, i32, i32) {
    %c0_i32 = arith.constant 0 : i32
    %c0_i32_0 = arith.constant 0 : i32
    %c0_i32_1 = arith.constant 0 : i32
    return %arg0, %c0_i32, %c0_i32_0 : i32, i32, i32
  }
}

</mosaic_0001>

<bundles_post_ra>
// kernel: tpu_custom_call.1
= control target key start
LH: loop header
LB: loop body
LE: loop exit
PB: predicated region body
PF: predicated region fallthrough
CT: control target
= control target key end

     0   :  { %7 = vsyncpa [#allocation3], 0  ;;  %s201_s0 = inlined_call_operand.hbm [shape: f32[1,16,128], index: 0, kind: input, shape index: {}]   ;;  %s202_s1 = inlined_call_operand.hbm [shape: f32[1,16,128], index: 1, kind: input, shape index: {}]   ;;  %s203_s2 = inlined_call_operand.hbm [shape: f32[1,8,128], index: 2, kind: output, shape index: {}]  }
   0x1   :  { %8 = vsyncpa [#allocation6], 0 }
   0x2   :  { %9 = vsyncpa [#allocation4], 0  ;;  %s145_s9 = smov [#allocation2]   ;;  %s73_s13 = scalar_lea.hbm %s201_s0, 256 }
   0x3   :  { %s15_s10 = sshll.u32 %s145_s9, 4  ;;  %p74_p0 = scmp.ne.s32.totalorder %s201_s0, %s73_s13  ;;  %s16_s10 = int_to_ptr.vmem [resolvable:$true] %s15_s10 }
   0x4   :  { %p77_p1 = scmp.lt.u32.totalorder %s73_s13, %s201_s0 }
   0x6   :  { %p79_p2 = pnand %p77_p1, %p74_p0 }
   0x8   :  { %82 = shalt.err (!%p79_p2)
}
   0x9   :  { %s83_s18 = scalar_lea.vmem %s16_s10, 256  ;;  %p88_p4 = scmp.lt.s32.totalorder %s16_s10, %s16_s10 }
   0xa   :  { %p84_p3 = scmp.ne.s32.totalorder %s16_s10, %s83_s18  ;;  %p89_p5 = scmp.lt.s32.totalorder %s83_s18, %s83_s18 }
   0xc   :  { %p90_p6 = por %p89_p5, %p88_p4 }
   0xe   :  { %p91_p7 = pnand %p90_p6, %p84_p3 }
  0x10   :  { %94 = shalt.err (!%p91_p7)
}
  0x11   :  { %s146_s19 = smov 128   ;;  %s147_s20 = smov 8  }
  0x12   :  { %21 = dma.hbm_to_vmem [thread:$0]  %s201_s0, 256, %s16_s10, [#allocation3], %s146_s19, %s146_s19, %s147_s20  }
  0x13   :  { %s148_s23 = smov [#allocation5]   ;;  %s95_s27 = scalar_lea.hbm %s202_s1, 256 }
  0x14   :  { %s27_s24 = sshll.u32 %s148_s23, 4  ;;  %p96_p8 = scmp.ne.s32.totalorder %s202_s1, %s95_s27  ;;  %s28_s24 = int_to_ptr.vmem [resolvable:$true] %s27_s24 }
  0x15   :  { %p99_p9 = scmp.lt.u32.totalorder %s95_s27, %s202_s1 }
  0x17   :  { %p101_p10 = pnand %p99_p9, %p96_p8 }
  0x19   :  { %104 = shalt.err (!%p101_p10)
}
  0x1a   :  { %s105_s4 = scalar_lea.vmem %s28_s24, 256  ;;  %p110_p12 = scmp.lt.s32.totalorder %s28_s24, %s28_s24 }
  0x1b   :  { %p106_p11 = scmp.ne.s32.totalorder %s28_s24, %s105_s4  ;;  %p111_p13 = scmp.lt.s32.totalorder %s105_s4, %s105_s4 }
  0x1d   :  { %p112_p0 = por %p111_p13, %p110_p12 }
  0x1f   :  { %p113_p1 = pnand %p112_p0, %p106_p11 }
  0x21   :  { %116 = shalt.err (!%p113_p1)
}
  0x22   :  { %33 = dma.hbm_to_vmem [thread:$0]  %s202_s1, 256, %s28_s24, [#allocation6], %s146_s19, %s146_s19, %s147_s20  }
  0x23   :  { %139 = dma.done.wait [#allocation3], 256  }
  0x24   :  { %140 = vsyncadd [#allocation3], 4294967040 }
  0x25   :  { %141 = dma.done.wait [#allocation6], 256  }
  0x26   :  { %142 = vsyncadd [#allocation6], 4294967040  ;;  %v40_v0 = vld [vmem:[#allocation5] sm:$0xff]  ;;  %v41_v1 = vld [vmem:[#allocation5 + $0x8] sm:$0xff]  ;;  %s149_s6 = smov [#allocation7]  }
  0x27   :  { %v44_v2 = vld [vmem:[#allocation2] sm:$0xff]  ;;  %v42_v3 = vadd.f32 1.0, %v40_v0  ;;  %v43_v4 = vadd.f32 1.0, %v41_v1  ;;  %v45_v5 = vld [vmem:[#allocation2 + $0x8] sm:$0xff]  ;;  %s58_s7 = sshll.u32 %s149_s6, 4  ;;  %s59_s7 = int_to_ptr.vmem [resolvable:$true] %s58_s7 }
  0x28   :  { %s117_s1 = scalar_lea.vmem %s59_s7, 128  ;;  %p122_p3 = scmp.lt.s32.totalorder %s59_s7, %s59_s7 }
  0x29   :  { %v46_v6 = vsub.f32 %v42_v3, %v44_v2  ;;  %v47_v7 = vsub.f32 %v43_v4, %v45_v5  ;;  %p118_p2 = scmp.ne.s32.totalorder %s59_s7, %s117_s1  ;;  %p123_p4 = scmp.lt.s32.totalorder %s117_s1, %s117_s1 }
  0x2b   :  { %v48_v8 = vmax.f32 %v46_v6, 0.0  ;;  %v49_v9 = vmax.f32 %v47_v7, 0.0  ;;  %p124_p5 = por %p123_p4, %p122_p3 }
  0x2d   :  { %v50_v10 = vadd.f32 %v49_v9, %v48_v8  ;;  %p125_p6 = pnand %p124_p5, %p118_p2 }
  0x2f   :  { %51 = vst [vmem:[#allocation7] sm:$0xff] %v50_v10 }
  0x30   :  { %128 = shalt.err (!%p125_p6)
}
  0x31   :  { %s129_s10 = scalar_lea.hbm %s203_s2, 128 }
  0x32   :  { %p130_p7 = scmp.ne.s32.totalorder %s203_s2, %s129_s10  ;;  %p133_p8 = scmp.lt.u32.totalorder %s129_s10, %s203_s2 }
  0x34   :  { %p135_p9 = pnand %p133_p8, %p130_p7 }
  0x36   :  { %138 = shalt.err (!%p135_p9)
}
  0x37   :  { %61 = dma.vmem_to_hbm [thread:$0]  %s59_s7, 128, %s203_s2, [#allocation4]  }
  0x38   :  { %143 = dma.done.wait [#allocation4], 128  }
  0x39   :  { %144 = vsyncadd [#allocation4], 4294967168 }
  0x3a   :  { %65 = vsyncpa [#allocation3], 1 }
  0x3b   :  { %66 = vsyncpa [#allocation6], 1 }
  0x3c   :  { %67 = vsyncpa [#allocation4], 1 }

</bundles_post_ra>
